<compile_context>
chip_gen: v7x
topology: tpu7x:2x2x1
jax: 0.10.0
libtpu: 0.0.40
codegen_flags: <defaults>
</compile_context>

<pallas_src>
import math

import jax
import jax.numpy as jnp
from jax.experimental import pallas as pl
from jax.experimental.pallas import tpu as pltpu


# ----------------------------- Pallas kernel ------------------------------ #
def _flatten_copy_kernel(x_ref, o_ref):
    # Straight lane-dense tile copy: (N, TF) in -> (N, TF) out.
    o_ref[...] = x_ref[...]


# ------------------------------ tile picker -------------------------------- #
def _choose_f_tile(F, N, itemsize):
    """Largest lane-dense (multiple-of-128) tile along F that divides F,
    fits a ~2 MiB per-block budget, and leaves >=2 grid steps when possible."""
    if F % 128 != 0:
        # Fall back to the full array as a single block (always a legal
        # block shape); still a single unmasked slab store per row group.
        return F
    budget_elems = (2 * 1024 * 1024) // itemsize // max(N, 1)
    tf = F
    while (tf // 2) % 128 == 0 and (tf > budget_elems or F // tf < 2):
        tf //= 2
    return max(tf, 128)


# -------------------------------- wrapper ---------------------------------- #
@jax.jit
def flatten(x):
    """Matches Flatten.forward: x.view(x.size(0), -1)."""
    N = x.shape[0]
    F = math.prod(x.shape[1:]) if x.ndim > 1 else 1

    # Row-major reshape == torch .view on a contiguous tensor; free in XLA.
    x2 = x.reshape(N, F)

    tf = _choose_f_tile(F, N, jnp.dtype(x2.dtype).itemsize)
    grid = (F // tf,)

    out = pl.pallas_call(
        _flatten_copy_kernel,
        out_shape=jax.ShapeDtypeStruct((N, F), x.dtype),
        grid_spec=pltpu.PrefetchScalarGridSpec(
            num_scalar_prefetch=0,
            grid=grid,
            in_specs=[pl.BlockSpec((N, tf), lambda j: (0, j))],
            out_specs=pl.BlockSpec((N, tf), lambda j: (0, j)),
        ),
        compiler_params=pltpu.CompilerParams(
            dimension_semantics=("parallel",)),
    )(x2)
    return out


# --------------------------------- main ------------------------------------ #
if __name__ == "__main__":
    key = jax.random.PRNGKey(0)
    # Shapes consistent with the module: batch=2, channels=4, spatial=16x16.
    x = jax.random.normal(key, (2, 4, 16, 16), dtype=jnp.float32)

    out = flatten(x)
    out = jax.block_until_ready(out)

    ref = x.reshape(x.shape[0], -1)
    assert out.shape == (2, 4 * 16 * 16), out.shape
    assert bool(jnp.array_equal(out, ref)), float(jnp.max(jnp.abs(out - ref)))

    print("KERNEL_OK")
</pallas_src>

<mosaic_0001>
module attributes {stable_mosaic.version = 11 : i64} {
  func.func @_flatten_copy_kernel(%arg0: i32, %arg1: memref<2x512xf32, #tpu.memory_space<vmem>>, %arg2: memref<2x512xf32, #tpu.memory_space<vmem>>) attributes {dimension_semantics = [#tpu.dimension_semantics<parallel>], iteration_bounds = array<i64: 2>, scalar_prefetch = 0 : i64, scratch_operands = 0 : i64, tpu.core_type = #tpu.core_type<tc>, window_params = [{transform_indices = @transform_0, window_bounds = array<i64: 2, 512>}, {transform_indices = @transform_1, window_bounds = array<i64: 2, 512>}]} {
    %c0 = arith.constant 0 : index
    %c0_0 = arith.constant 0 : index
    %0 = vector.load %arg1[%c0, %c0_0] : memref<2x512xf32, #tpu.memory_space<vmem>>, vector<2x512xf32>
    %c0_1 = arith.constant 0 : index
    %c0_2 = arith.constant 0 : index
    %1 = vector.load %arg2[%c0_1, %c0_2] : memref<2x512xf32, #tpu.memory_space<vmem>>, vector<2x512xf32>
    tpu.vector_store %arg2[%c0_1, %c0_2], %0 {strides = array<i32>} : memref<2x512xf32, #tpu.memory_space<vmem>>, vector<2x512xf32>,
    return
  }
  func.func @transform_0(%arg0: i32) -> (i32, i32) {
    %c0_i32 = arith.constant 0 : i32
    %c0_i32_0 = arith.constant 0 : i32
    return %c0_i32, %arg0 : i32, i32
  }
  func.func @transform_1(%arg0: i32) -> (i32, i32) {
    %c0_i32 = arith.constant 0 : i32
    %c0_i32_0 = arith.constant 0 : i32
    return %c0_i32, %arg0 : i32, i32
  }
}

</mosaic_0001>

<bundles_post_ra>
// kernel: flatten.1
= control target key start
LH: loop header
LB: loop body
LE: loop exit
PB: predicated region body
PF: predicated region fallthrough
CT: control target
= control target key end

     0   :  { %6 = vsyncpa [#allocation3], 0  ;;  %s420_s0 = inlined_call_operand.vmem [shape: f32[2,1024], index: 0, kind: input, shape index: {}]   ;;  %s421_s1 = inlined_call_operand.hbm [shape: f32[2,1024], index: 1, kind: output, shape index: {}]  }
   0x1   :  { %8 = vsyncpa [#allocation3 + $0x1], 0  ;;  %s321_s6 = smov 0   ;;  %s323_s7 = smov 0  }
   0x2   :  { %s325_s8 = smov 0   ;;  %s327_s9 = smov 0  }
   0x3 LB: > { %s342_s10 = sadd.s32 4294967295, %s308_s9   ;;  %s194_s11 = sadd.s32 4294967294, %s308_s9   ;;  %s308_s9 = sphi %s327_s9, %s427_s9   ;;  %s304_s8 = sphi %s325_s8, %s426_s8   ;;  %s300_s7 = sphi %s323_s7, %s425_s7   ;;  %s296_s6 = sphi %s321_s6, %s424_s6  }
   0x4   : > { %s346_s12 = sadd.s32 1, %s308_s9   ;;  %s47_s13 = sadd.s32 1, %s304_s8 }
   0x5   : > { %s44_s14 = ssub.s32 %s308_s9, %s346_s12  ;;  %p57_p0 = scmp.ne.s32.totalorder %s304_s8, %s300_s7 }
   0x6   : > { %p45_p1 = scmp.eq.s32.totalorder %s44_s14, 0  ;;  %p58_p2 = scmp.eq.s32.totalorder %s342_s10, 1 }
   0x7   : > { %p63_p3 = scmp.ne.s32.totalorder %s300_s7, %s296_s6  ;;  %p64_p4 = scmp.eq.s32.totalorder %s194_s11, 1 }
   0x8   : > { %s357_s15 = scalar_select %p45_p1, %s304_s8, %s47_s13  }
   0x9   : > { %p359_p5 = por %p58_p2, %p57_p0  ;;  %p363_p6 = por %p64_p4, %p63_p3 }
   0xa   : > { %p197_p7 = scmp.ge.s32.totalorder %s308_s9, 1  ;;  %p91_p8 = scmp.lt.s32.totalorder %s308_s9, 3 }
   0xc   : > { %p92_p9 = pnand %p197_p7, %p91_p8 }
   0xd   : > { %s108_s18 = sand.u32 (!%p92_p9), 1, %s300_s7   ;;  %s199_s19 = sshll.u32 (!%p92_p9), %s342_s10, 2 }
   0xe   : > { %95 = sbr.rel (%p92_p9) target bundleno = 41 (0x29), region = 24  ;;  %s198_s20 = sshll.u32 (!%p92_p9), %s108_s18, 3 }
   0xf   : > { %p112_p10 = scmp.lt.s32.totalorder (!%p92_p9), %s199_s19, 7  ;;  %s110_s21 = scalar_lea.vmem (!%p92_p9), [#allocation2], %s198_s20 }
  0x10   : > { %s135_s22 = sshll.u32 (!%p92_p9), %s110_s21, 4  ;;  %s206_s23 = sshll.u32 (!%p92_p9), %s342_s10, 7  ;;  %s372_s22 = int_to_ptr.vmem [resolvable:$true] %s135_s22 }
  0x11   : > { %s380_s30 = scalar_lea.hbm (!%p92_p9), %s421_s1, %s206_s23  ;;  %s121_s2 = scalar_lea.sflag (!%p92_p9), [#allocation3], %s108_s18 }
  0x12   : > { %s246_s3 = scalar_lea.vmem (!%p92_p9), %s372_s22, 128  ;;  %s310_s4 = smov (!%p92_p9), [#allocation2]  }
  0x13   : > { %p247_p11 = scmp.ne.s32.totalorder (!%p92_p9), %s372_s22, %s246_s3  ;;  %s250_s5 = sshll.u32 (!%p92_p9), %s310_s4, 4  ;;  %s251_s5 = int_to_ptr.vmem [resolvable:$false] %s250_s5 }
  0x14   : > { %s252_s10 = scalar_lea.vmem (!%p92_p9), %s251_s5, 256  ;;  %p253_p0 = scmp.lt.s32.totalorder (!%p92_p9), %s372_s22, %s251_s5 }
  0x15   : > { %s429_s19 = smov (!%p112_p10, %s199_s19), 7  ;;  %p248_p12 = pnand %p247_p11, %p359_p5 }
  0x16   : > { %s200_s24 = sshll.u32 %s429_s19, 1  ;;  %p254_p1 = scmp.lt.s32.totalorder %s252_s10, %s246_s3 }
  0x17   : > { %s115_s27 = scalar_lea.vmem %s420_s0, %s200_s24  ;;  %p249_p13 = pneg %p248_p12 }
  0x18   : > { %v118_v0 = vld [vmem:[%s115_s27] sm:$0xff]  ;;  %p255_p2 = por %p254_p1, %p253_p0 }
  0x19   : > { %119 = vst [vmem:[%s110_s21] sm:$0xff] %v118_v0 }
  0x1a   : > { %p256_p3 = pnand %p255_p2, %p249_p13 }
  0x1c   : > { %259 = shalt.err (!%p256_p3)
}
  0x1d   : > { %s260_s11 = scalar_lea.hbm %s380_s30, 128  ;;  %s264_s18 = scalar_lea.hbm %s421_s1, 256 }
  0x1e   : > { %p261_p4 = scmp.ne.s32.totalorder %s380_s30, %s260_s11  ;;  %p265_p9 = scmp.lt.u32.totalorder %s380_s30, %s421_s1 }
  0x1f   : > { %p266_p10 = scmp.lt.u32.totalorder %s264_s18, %s260_s11  ;;  %p268_p12 = scmp.lt.u32.totalorder %s260_s11, %s380_s30 }
  0x20   : > { %p262_p7 = pnand %p261_p4, %p359_p5 }
  0x21   : > { %p267_p11 = por %p266_p10, %p265_p9 }
  0x22   : > { %p263_p8 = pneg %p262_p7 }
  0x23   : > { %p269_p13 = por %p268_p12, %p267_p11 }
  0x25   : > { %p270_p0 = pnand %p269_p13, %p263_p8 }
  0x27   : > { %273 = shalt.err (!%p270_p0)
}
  0x28   : > { %207 = dma.vmem_to_hbm [thread:$0]  (%p359_p5), %s372_s22, 128, %s380_s30, %s121_s2  }
  0x29 PF: > { %p213_p1 = scmp.ge.s32.totalorder %s308_s9, 2  ;;  %s147_s21 = sand.u32 1, %s296_s6  }
  0x2a   : > { %s148_s23 = scalar_lea.sflag [#allocation3], %s147_s21 }
  0x2b   : > { %p210_p2 = pnand %p213_p1, %p363_p6 }
  0x2d   : > { %291 = dma.done.wait (!%p210_p2), %s148_s23, 128  }
  0x2e   : > { %293 = vsyncadd (!%p210_p2), %s148_s23, 4294967168  ;;  %p11_p3 = scmp.ge.s32.totalorder %s346_s12, 4   ;;  %s424_s6 = smov %s300_s7 }
  0x2f   : > { %s425_s7 = smov %s304_s8  ;;  %s426_s8 = smov %s357_s15 }
  0x30   : > { %s427_s9 = smov %s346_s12  ;;  %13 = sbr.rel (!%p11_p3) target bundleno = 3 (0x3), region = 59 }
  0x37   :  { %153 = vsyncpa [#allocation3], 1 }
  0x38   :  { %155 = vsyncpa [#allocation3 + $0x1], 1 }

</bundles_post_ra>
